<compile_context>
chip_gen: v6e
topology: v6e:2x2x1
jax: 0.10.0
libtpu: 0.0.40
codegen_flags: <defaults>
</compile_context>

<pallas_src>
import jax
import jax.numpy as jnp
from jax import lax
from jax.experimental import pallas as pl
from jax.experimental.pallas import tpu as pltpu

# ----- small config (LlamaConfig-like) -----
HIDDEN = 32
NUM_HEADS = 4
NUM_KV_HEADS = 2
HEAD_DIM = HIDDEN // NUM_HEADS             # 8
NUM_KV_GROUPS = NUM_HEADS // NUM_KV_HEADS  # 2
SEQ = 8
ROPE_THETA = 10000.0
WORLD_SIZE = 1                             # single rank -> full projections, all_reduce = identity

Q_SIZE = NUM_HEADS * HEAD_DIM              # 32
KV_SIZE = NUM_KV_HEADS * HEAD_DIM          # 16
HS = NUM_HEADS * SEQ                       # 32  (head-stacked row count)
HALF = HEAD_DIM // 2
SCALE = 1.0 / float(HEAD_DIM) ** 0.5
LOG2_SEQ = SEQ.bit_length() - 1            # SEQ is a power of two
assert (1 << LOG2_SEQ) == SEQ


# ---------------- fused Pallas kernel ----------------

def _fused_attn_kernel(x_ref, wqkv_ref, wo_ref, cos_ref, sin_ref, o_ref):
    """One invocation: QKV matmul, RoPE, batched GQA causal SDPA (all heads), O projection."""
    x = x_ref[...]                                                      # (S, HIDDEN) f32

    # --- QKV projection: one MXU matmul, f32 accumulation ---
    qkv = jnp.dot(x, wqkv_ref[...], preferred_element_type=jnp.float32)  # (S, 64)

    # --- head-stacked layout: heads along sublanes, head_dim along lanes ---
    # q_s[h*S + s, :] = q_head_h[s, :]; GQA by broadcasting kv head (h // groups) while stacking,
    # so repeat_kv is never materialized and K/V are read once.
    q_s = jnp.concatenate(
        [qkv[:, h * HEAD_DIM:(h + 1) * HEAD_DIM] for h in range(NUM_HEADS)], axis=0)   # (H*S, D)
    k_s = jnp.concatenate(
        [qkv[:, Q_SIZE + (h // NUM_KV_GROUPS) * HEAD_DIM:
                Q_SIZE + (h // NUM_KV_GROUPS + 1) * HEAD_DIM]
         for h in range(NUM_HEADS)], axis=0)                                            # (H*S, D)
    v_s = jnp.concatenate(
        [qkv[:, Q_SIZE + KV_SIZE + (h // NUM_KV_GROUPS) * HEAD_DIM:
                Q_SIZE + KV_SIZE + (h // NUM_KV_GROUPS + 1) * HEAD_DIM]
         for h in range(NUM_HEADS)], axis=0)                                            # (H*S, D)

    # --- RoPE in the stacked layout: cos/sin stay (S, D), broadcast per head in-kernel ---
    cos_s = jnp.concatenate([cos_ref[...]] * NUM_HEADS, axis=0)          # (H*S, D)
    sin_s = jnp.concatenate([sin_ref[...]] * NUM_HEADS, axis=0)          # (H*S, D)

    def _rope(t):
        # rotate_half([x1, x2]) = [-x2, x1]; each stacked row is one full head, so a half-lane
        # swap+negate is exact.  (pltpu.roll(shift=HALF) + pre-signed sin is the scalable variant.)
        t_rot = jnp.concatenate([-t[:, HALF:], t[:, :HALF]], axis=-1)
        return t * cos_s + t_rot * sin_s

    q_s = _rope(q_s) * SCALE      # fold 1/sqrt(D) into q once (off the per-head critical path)
    k_s = _rope(k_s)

    # TODO(synk): request_cache.update (stateful per-request KV cache) — modeled as prefill with no
    # prior history, so the freshly-projected k_s / v_s are used directly.

    # --- ONE scores matmul for all heads, contracting head_dim (no explicit transpose) ---
    scores = lax.dot_general(q_s, k_s, (((1,), (1,)), ((), ())),
                             preferred_element_type=jnp.float32)         # (H*S, H*S)

    # Combined block-diagonal (same head) + causal mask from in-kernel iota (no HBM mask input).
    row = lax.broadcasted_iota(jnp.int32, (HS, HS), 0)
    col = lax.broadcasted_iota(jnp.int32, (HS, HS), 1)
    same_head = (row >> LOG2_SEQ) == (col >> LOG2_SEQ)
    causal = (col & (SEQ - 1)) <= (row & (SEQ - 1))
    scores = scores + jnp.where(same_head & causal, 0.0, -1e30).astype(jnp.float32)

    # --- ONE softmax over the (H*S, H*S) slab; masked entries exp to 0 ---
    s_max = jnp.max(scores, axis=-1, keepdims=True)
    p = jnp.exp(scores - s_max)
    denom = jnp.sum(p, axis=-1, keepdims=True)
    p = p * pl.reciprocal(denom, approx=True)            # EUP reciprocal (inference-grade)

    # --- ONE p @ v matmul; p is block-diagonal so heads never mix ---
    attn_s = jnp.dot(p, v_s, preferred_element_type=jnp.float32)         # (H*S, D)

    # --- re-assemble the lane-dense (S, H*D) slab and run ONE O-projection matmul ---
    attn = jnp.concatenate(
        [attn_s[h * SEQ:(h + 1) * SEQ, :] for h in range(NUM_HEADS)], axis=1)           # (S, H*D)
    out = jnp.dot(attn, wo_ref[...], preferred_element_type=jnp.float32)                # (S, HIDDEN)

    # comm.all_reduce is the identity for world_size == 1.
    o_ref[...] = out.astype(o_ref.dtype)


def merged_sdpa_attention(hidden_states, cos, sin, w_qkv, w_o):
    """hidden_states: (S, HIDDEN); cos/sin: (S, HEAD_DIM); weights stored as (in, out)."""
    q_len, _ = hidden_states.shape
    vmem = pltpu.MemorySpace.VMEM

    out = pl.pallas_call(
        _fused_attn_kernel,
        out_shape=jax.ShapeDtypeStruct((q_len, HIDDEN), hidden_states.dtype),
        in_specs=[pl.BlockSpec(memory_space=vmem)] * 5,   # pin every operand in VMEM explicitly
        out_specs=pl.BlockSpec(memory_space=vmem),
        # grid=() : single invocation; all operands whole-array resident in VMEM (toy shapes).
    )(hidden_states, w_qkv, w_o,
      cos.astype(jnp.float32), sin.astype(jnp.float32))
    return out, None


# ---------------- pure-JAX reference (mirrors the PyTorch module) ----------------

def _reference_forward(hidden_states, cos, sin, w_qkv, w_o):
    qkv = hidden_states @ w_qkv
    q = qkv[:, :Q_SIZE].reshape(SEQ, NUM_HEADS, HEAD_DIM)
    k = qkv[:, Q_SIZE:Q_SIZE + KV_SIZE].reshape(SEQ, NUM_KV_HEADS, HEAD_DIM)
    v = qkv[:, Q_SIZE + KV_SIZE:].reshape(SEQ, NUM_KV_HEADS, HEAD_DIM)

    def rotate_half(x):
        x1, x2 = jnp.split(x, 2, axis=-1)
        return jnp.concatenate([-x2, x1], axis=-1)

    cos_u, sin_u = cos[:, None, :], sin[:, None, :]
    q = q * cos_u + rotate_half(q) * sin_u
    k = k * cos_u + rotate_half(k) * sin_u

    k = jnp.repeat(k, NUM_KV_GROUPS, axis=1)
    v = jnp.repeat(v, NUM_KV_GROUPS, axis=1)

    qh, kh, vh = (jnp.transpose(t, (1, 0, 2)) for t in (q, k, v))
    scale = 1.0 / (HEAD_DIM ** 0.5)
    s = jnp.einsum('hqd,hkd->hqk', qh, kh) * scale
    causal = jnp.tril(jnp.ones((SEQ, SEQ), dtype=bool))
    s = jnp.where(causal[None], s, -1e30)
    p = jax.nn.softmax(s, axis=-1)
    attn = jnp.einsum('hqk,hkd->hqd', p, vh)
    attn = jnp.transpose(attn, (1, 0, 2)).reshape(SEQ, -1)
    return attn @ w_o


if __name__ == "__main__":
    key = jax.random.PRNGKey(0)
    k1, k2, k3 = jax.random.split(key, 3)

    # Deterministic parameters (nn.Linear, bias=False), stored as (in, out)
    w_qkv = (jax.random.normal(k1, (HIDDEN, Q_SIZE + 2 * KV_SIZE), jnp.float32)
             * (1.0 / HIDDEN ** 0.5))
    w_o = (jax.random.normal(k2, (Q_SIZE, HIDDEN), jnp.float32)
           * (1.0 / Q_SIZE ** 0.5))

    # Inputs
    hidden_states = jax.random.normal(k3, (SEQ, HIDDEN), jnp.float32)

    # Standard Llama RoPE tables (S, HEAD_DIM)
    positions = jnp.arange(SEQ, dtype=jnp.float32)
    inv_freq = 1.0 / (ROPE_THETA ** (jnp.arange(0, HEAD_DIM, 2, dtype=jnp.float32) / HEAD_DIM))
    freqs = positions[:, None] * inv_freq[None, :]
    emb = jnp.concatenate([freqs, freqs], axis=-1)
    cos, sin = jnp.cos(emb), jnp.sin(emb)

    out, _ = merged_sdpa_attention(hidden_states, cos, sin, w_qkv, w_o)
    out = jax.block_until_ready(out)
    assert out.shape == (SEQ, HIDDEN)

    # Correctness check against plain-JAX reference.
    # Tolerance accommodates pl.reciprocal(approx=True) in the softmax (inference-grade; do not
    # reuse this kernel for training/backward without switching to an exact divide).
    ref = _reference_forward(hidden_states, cos, sin, w_qkv, w_o)
    max_err = float(jnp.max(jnp.abs(out - ref)))
    assert max_err < 5e-2, f"max abs err {max_err}"

    print("KERNEL_OK")
</pallas_src>

<mosaic_0001>
module attributes {stable_mosaic.version = 11 : i64} {
  func.func @_fused_attn_kernel(%arg0: memref<8x32xf32, #tpu.memory_space<vmem>>, %arg1: memref<32x64xf32, #tpu.memory_space<vmem>>, %arg2: memref<32x32xf32, #tpu.memory_space<vmem>>, %arg3: memref<8x8xf32, #tpu.memory_space<vmem>>, %arg4: memref<8x8xf32, #tpu.memory_space<vmem>>, %arg5: memref<8x32xf32, #tpu.memory_space<vmem>>) attributes {dimension_semantics = [], scalar_prefetch = 0 : i64, scratch_operands = 0 : i64, tpu.core_type = #tpu.core_type<tc>} {
    %c0 = arith.constant 0 : index
    %c0_0 = arith.constant 0 : index
    %0 = vector.load %arg0[%c0, %c0_0] : memref<8x32xf32, #tpu.memory_space<vmem>>, vector<8x32xf32>
    %c0_1 = arith.constant 0 : index
    %c0_2 = arith.constant 0 : index
    %1 = vector.load %arg1[%c0_1, %c0_2] : memref<32x64xf32, #tpu.memory_space<vmem>>, vector<32x64xf32>
    %cst = arith.constant dense<0.000000e+00> : vector<8x64xf32>
    %2 = tpu.matmul %0, %1, %cst {dimension_numbers = #tpu.dot_dimension_numbers<[1], [0], [0], [1], [0, 0, 1, 1], [], []>} : vector<8x32xf32>, vector<32x64xf32>, vector<8x64xf32> -> vector<8x64xf32>
    %3 = vector.extract_strided_slice %2 {offsets = [0, 0], sizes = [8, 8], strides = [1, 1]} : vector<8x64xf32> to vector<8x8xf32>
    %4 = vector.extract_strided_slice %2 {offsets = [0, 8], sizes = [8, 8], strides = [1, 1]} : vector<8x64xf32> to vector<8x8xf32>
    %5 = vector.extract_strided_slice %2 {offsets = [0, 16], sizes = [8, 8], strides = [1, 1]} : vector<8x64xf32> to vector<8x8xf32>
    %6 = vector.extract_strided_slice %2 {offsets = [0, 24], sizes = [8, 8], strides = [1, 1]} : vector<8x64xf32> to vector<8x8xf32>
    %7 = tpu.concatenate %3, %4, %5, %6 in 0 : vector<8x8xf32>, vector<8x8xf32>, vector<8x8xf32>, vector<8x8xf32> -> vector<32x8xf32>
    %8 = vector.extract_strided_slice %2 {offsets = [0, 32], sizes = [8, 8], strides = [1, 1]} : vector<8x64xf32> to vector<8x8xf32>
    %9 = vector.extract_strided_slice %2 {offsets = [0, 32], sizes = [8, 8], strides = [1, 1]} : vector<8x64xf32> to vector<8x8xf32>
    %10 = vector.extract_strided_slice %2 {offsets = [0, 40], sizes = [8, 8], strides = [1, 1]} : vector<8x64xf32> to vector<8x8xf32>
    %11 = vector.extract_strided_slice %2 {offsets = [0, 40], sizes = [8, 8], strides = [1, 1]} : vector<8x64xf32> to vector<8x8xf32>
    %12 = tpu.concatenate %8, %9, %10, %11 in 0 : vector<8x8xf32>, vector<8x8xf32>, vector<8x8xf32>, vector<8x8xf32> -> vector<32x8xf32>
    %13 = vector.extract_strided_slice %2 {offsets = [0, 48], sizes = [8, 8], strides = [1, 1]} : vector<8x64xf32> to vector<8x8xf32>
    %14 = vector.extract_strided_slice %2 {offsets = [0, 48], sizes = [8, 8], strides = [1, 1]} : vector<8x64xf32> to vector<8x8xf32>
    %15 = vector.extract_strided_slice %2 {offsets = [0, 56], sizes = [8, 8], strides = [1, 1]} : vector<8x64xf32> to vector<8x8xf32>
    %16 = vector.extract_strided_slice %2 {offsets = [0, 56], sizes = [8, 8], strides = [1, 1]} : vector<8x64xf32> to vector<8x8xf32>
    %17 = tpu.concatenate %13, %14, %15, %16 in 0 : vector<8x8xf32>, vector<8x8xf32>, vector<8x8xf32>, vector<8x8xf32> -> vector<32x8xf32>
    %c0_3 = arith.constant 0 : index
    %c0_4 = arith.constant 0 : index
    %18 = vector.load %arg3[%c0_3, %c0_4] : memref<8x8xf32, #tpu.memory_space<vmem>>, vector<8x8xf32>
    %19 = tpu.concatenate %18, %18, %18, %18 in 0 : vector<8x8xf32>, vector<8x8xf32>, vector<8x8xf32>, vector<8x8xf32> -> vector<32x8xf32>
    %c0_5 = arith.constant 0 : index
    %c0_6 = arith.constant 0 : index
    %20 = vector.load %arg4[%c0_5, %c0_6] : memref<8x8xf32, #tpu.memory_space<vmem>>, vector<8x8xf32>
    %21 = tpu.concatenate %20, %20, %20, %20 in 0 : vector<8x8xf32>, vector<8x8xf32>, vector<8x8xf32>, vector<8x8xf32> -> vector<32x8xf32>
    %22 = vector.extract_strided_slice %7 {offsets = [0, 4], sizes = [32, 4], strides = [1, 1]} : vector<32x8xf32> to vector<32x4xf32>
    %cst_7 = arith.constant 0.000000e+00 : f32
    %23 = vector.broadcast %cst_7 : f32 to vector<32x4xf32>
    %24 = arith.subf %23, %22 : vector<32x4xf32>
    %25 = vector.extract_strided_slice %7 {offsets = [0, 0], sizes = [32, 4], strides = [1, 1]} : vector<32x8xf32> to vector<32x4xf32>
    %26 = tpu.concatenate %24, %25 in 1 : vector<32x4xf32>, vector<32x4xf32> -> vector<32x8xf32>
    %27 = arith.mulf %7, %19 : vector<32x8xf32>
    %28 = arith.mulf %26, %21 : vector<32x8xf32>
    %29 = arith.addf %27, %28 : vector<32x8xf32>
    %cst_8 = arith.constant 0.353553385 : f32
    %30 = vector.broadcast %cst_8 : f32 to vector<32x8xf32>
    %31 = arith.mulf %29, %30 : vector<32x8xf32>
    %32 = vector.extract_strided_slice %12 {offsets = [0, 4], sizes = [32, 4], strides = [1, 1]} : vector<32x8xf32> to vector<32x4xf32>
    %cst_9 = arith.constant 0.000000e+00 : f32
    %33 = vector.broadcast %cst_9 : f32 to vector<32x4xf32>
    %34 = arith.subf %33, %32 : vector<32x4xf32>
    %35 = vector.extract_strided_slice %12 {offsets = [0, 0], sizes = [32, 4], strides = [1, 1]} : vector<32x8xf32> to vector<32x4xf32>
    %36 = tpu.concatenate %34, %35 in 1 : vector<32x4xf32>, vector<32x4xf32> -> vector<32x8xf32>
    %37 = arith.mulf %12, %19 : vector<32x8xf32>
    %38 = arith.mulf %36, %21 : vector<32x8xf32>
    %39 = arith.addf %37, %38 : vector<32x8xf32>
    %cst_10 = arith.constant dense<0.000000e+00> : vector<32x32xf32>
    %40 = tpu.matmul %31, %39, %cst_10 {dimension_numbers = #tpu.dot_dimension_numbers<[1], [1], [0], [0], [0, 0, 1, 0], [], []>} : vector<32x8xf32>, vector<32x8xf32>, vector<32x32xf32> -> vector<32x32xf32>
    %41 = tpu.iota {dimensions = array<i32: 0>} : vector<32x32xi32>
    %42 = tpu.iota {dimensions = array<i32: 1>} : vector<32x32xi32>
    %c3_i32 = arith.constant 3 : i32
    %43 = vector.broadcast %c3_i32 : i32 to vector<32x32xi32>
    %44 = arith.shrsi %41, %43 : vector<32x32xi32>
    %c3_i32_11 = arith.constant 3 : i32
    %45 = vector.broadcast %c3_i32_11 : i32 to vector<32x32xi32>
    %46 = arith.shrsi %42, %45 : vector<32x32xi32>
    %47 = arith.cmpi eq, %44, %46 : vector<32x32xi32>
    %c7_i32 = arith.constant 7 : i32
    %48 = vector.broadcast %c7_i32 : i32 to vector<32x32xi32>
    %49 = arith.andi %42, %48 : vector<32x32xi32>
    %c7_i32_12 = arith.constant 7 : i32
    %50 = vector.broadcast %c7_i32_12 : i32 to vector<32x32xi32>
    %51 = arith.andi %41, %50 : vector<32x32xi32>
    %52 = arith.cmpi sle, %49, %51 : vector<32x32xi32>
    %53 = arith.andi %47, %52 : vector<32x32xi1>
    %cst_13 = arith.constant 0.000000e+00 : f32
    %cst_14 = arith.constant -1.000000e+30 : f32
    %54 = vector.broadcast %cst_13 : f32 to vector<32x32xf32>
    %55 = vector.broadcast %cst_14 : f32 to vector<32x32xf32>
    %56 = arith.select %53, %54, %55 : vector<32x32xi1>, vector<32x32xf32>
    %57 = arith.addf %40, %56 : vector<32x32xf32>
    %cst_15 = arith.constant dense<0xFF800000> : vector<32xf32>
    %58 = vector.multi_reduction <maximumf>, %57, %cst_15 [1] : vector<32x32xf32> to vector<32xf32>
    %59 = vector.shape_cast %58 : vector<32xf32> to vector<32x1xf32>
    %60 = vector.broadcast %59 : vector<32x1xf32> to vector<32x32xf32>
    %61 = arith.subf %57, %60 : vector<32x32xf32>
    %62 = math.exp %61 : vector<32x32xf32>
    %cst_16 = arith.constant dense<0.000000e+00> : vector<32xf32>
    %63 = vector.multi_reduction <add>, %62, %cst_16 [1] : vector<32x32xf32> to vector<32xf32>
    %64 = vector.shape_cast %63 : vector<32xf32> to vector<32x1xf32>
    %65 = tpu.reciprocal %64 {approx = true} : vector<32x1xf32> -> vector<32x1xf32>
    %66 = vector.broadcast %65 : vector<32x1xf32> to vector<32x32xf32>
    %67 = arith.mulf %62, %66 : vector<32x32xf32>
    %cst_17 = arith.constant dense<0.000000e+00> : vector<32x8xf32>
    %68 = tpu.matmul %67, %17, %cst_17 {dimension_numbers = #tpu.dot_dimension_numbers<[1], [0], [0], [1], [0, 0, 1, 1], [], []>} : vector<32x32xf32>, vector<32x8xf32>, vector<32x8xf32> -> vector<32x8xf32>
    %69 = vector.extract_strided_slice %68 {offsets = [0, 0], sizes = [8, 8], strides = [1, 1]} : vector<32x8xf32> to vector<8x8xf32>
    %70 = vector.extract_strided_slice %68 {offsets = [8, 0], sizes = [8, 8], strides = [1, 1]} : vector<32x8xf32> to vector<8x8xf32>
    %71 = vector.extract_strided_slice %68 {offsets = [16, 0], sizes = [8, 8], strides = [1, 1]} : vector<32x8xf32> to vector<8x8xf32>
    %72 = vector.extract_strided_slice %68 {offsets = [24, 0], sizes = [8, 8], strides = [1, 1]} : vector<32x8xf32> to vector<8x8xf32>
    %73 = tpu.concatenate %69, %70, %71, %72 in 1 : vector<8x8xf32>, vector<8x8xf32>, vector<8x8xf32>, vector<8x8xf32> -> vector<8x32xf32>
    %c0_18 = arith.constant 0 : index
    %c0_19 = arith.constant 0 : index
    %74 = vector.load %arg2[%c0_18, %c0_19] : memref<32x32xf32, #tpu.memory_space<vmem>>, vector<32x32xf32>
    %cst_20 = arith.constant dense<0.000000e+00> : vector<8x32xf32>
    %75 = tpu.matmul %73, %74, %cst_20 {dimension_numbers = #tpu.dot_dimension_numbers<[1], [0], [0], [1], [0, 0, 1, 1], [], []>} : vector<8x32xf32>, vector<32x32xf32>, vector<8x32xf32> -> vector<8x32xf32>
    %c0_21 = arith.constant 0 : index
    %c0_22 = arith.constant 0 : index
    %76 = vector.load %arg5[%c0_21, %c0_22] : memref<8x32xf32, #tpu.memory_space<vmem>>, vector<8x32xf32>
    tpu.vector_store %arg5[%c0_21, %c0_22], %75 {strides = array<i32>} : memref<8x32xf32, #tpu.memory_space<vmem>>, vector<8x32xf32>,
    return
  }
}

</mosaic_0001>

<bundles_post_ra>
// kernel: tpu_custom_call.1
= control target key start
LH: loop header
LB: loop body
LE: loop exit
PB: predicated region body
PF: predicated region fallthrough
CT: control target
= control target key end

     0   :  { %10 = vsyncpa [#allocation3], 0  ;;  %s1074_s0 = inlined_call_operand.hbm [shape: f32[8,32], index: 0, kind: input, shape index: {}]   ;;  %s1075_s1 = inlined_call_operand.hbm [shape: f32[32,64], index: 1, kind: input, shape index: {}]   ;;  %s1076_s2 = inlined_call_operand.hbm [shape: f32[32,32], index: 2, kind: input, shape index: {}]   ;;  %s1077_s3 = inlined_call_operand.hbm [shape: f32[8,8], index: 3, kind: input, shape index: {}]   ;;  %s1078_s4 = inlined_call_operand.hbm [shape: f32[8,8], index: 4, kind: input, shape index: {}]   ;;  %s1079_s5 = inlined_call_operand.hbm [shape: f32[8,32], index: 5, kind: output, shape index: {}]  }
   0x1   :  { %11 = vsyncpa [#allocation6], 0 }
   0x2   :  { %12 = vsyncpa [#allocation9], 0 }
   0x3   :  { %13 = vsyncpa [#allocation4], 0  ;;  %s916_s18 = smov [#allocation5]  }
   0x4   :  { %s29_s19 = sshll.u32 %s916_s18, 4  ;;  %s30_s19 = int_to_ptr.vmem [resolvable:$true] %s29_s19 }
   0x5   :  { %s796_s20 = scalar_lea.vmem %s30_s19, 512  ;;  %p801_p1 = scmp.lt.s32.totalorder %s30_s19, %s30_s19 }
   0x6   :  { %p797_p0 = scmp.ne.s32.totalorder %s30_s19, %s796_s20  ;;  %p802_p2 = scmp.lt.s32.totalorder %s796_s20, %s796_s20 }
   0x8   :  { %p803_p3 = por %p802_p2, %p801_p1 }
   0xa   :  { %p804_p4 = pnand %p803_p3, %p797_p0 }
   0xc   :  { %807 = shalt.err (!%p804_p4)
}
   0xd   :  { %s917_s21 = smov 128   ;;  %s918_s22 = smov 8  }
   0xe   :  { %35 = dma.hbm_to_vmem [thread:$0]  %s1075_s1, 512, %s30_s19, [#allocation6], %s917_s21, %s917_s21, %s918_s22  }
   0xf   :  { %s919_s25 = smov [#allocation8]   ;;  %s920_s27 = smov [#allocation2]  }
  0x10   :  { %s54_s26 = sshll.u32 %s919_s25, 4  ;;  %s20_s28 = sshll.u32 %s920_s27, 4  ;;  %s55_s26 = int_to_ptr.vmem [resolvable:$true] %s54_s26  ;;  %s21_s28 = int_to_ptr.vmem [resolvable:$true] %s20_s28 }
  0x11   :  { %s816_s29 = scalar_lea.vmem %s55_s26, 128  ;;  %p821_p6 = scmp.lt.s32.totalorder %s55_s26, %s55_s26 }
  0x12   :  { %p817_p5 = scmp.ne.s32.totalorder %s55_s26, %s816_s29  ;;  %p822_p7 = scmp.lt.s32.totalorder %s816_s29, %s816_s29 }
  0x14   :  { %p823_p8 = por %p822_p7, %p821_p6 }
  0x16   :  { %p824_p9 = pnand %p823_p8, %p817_p5 }
  0x18   :  { %827 = shalt.err (!%p824_p9)
}
  0x19   :  { %57 = dma.hbm_to_vmem [thread:$0]  %s1077_s3, 128, %s55_s26, [#allocation9]  }
  0x1a   :  { %s836_s7 = scalar_lea.vmem %s21_s28, 128  ;;  %p841_p11 = scmp.lt.s32.totalorder %s21_s28, %s21_s28 }
  0x1b   :  { %p837_p10 = scmp.ne.s32.totalorder %s21_s28, %s836_s7  ;;  %p842_p12 = scmp.lt.s32.totalorder %s836_s7, %s836_s7 }
  0x1d   :  { %p843_p13 = por %p842_p12, %p841_p11 }
  0x1f   :  { %p844_p0 = pnand %p843_p13, %p837_p10 }
  0x21   :  { %847 = shalt.err (!%p844_p0)
}
  0x22   :  { %23 = dma.hbm_to_vmem [thread:$0]  %s1074_s0, 128, %s21_s28, [#allocation3]  }
  0x23   :  { %s921_s9 = smov [#allocation7]   ;;  %s922_s11 = smov [#allocation10]  }
  0x24   :  { %s41_s10 = sshll.u32 %s921_s9, 4  ;;  %s64_s12 = sshll.u32 %s922_s11, 4  ;;  %s42_s10 = int_to_ptr.vmem [resolvable:$true] %s41_s10  ;;  %s65_s12 = int_to_ptr.vmem [resolvable:$true] %s64_s12 }
  0x25   :  { %s856_s13 = scalar_lea.vmem %s42_s10, 512  ;;  %p861_p2 = scmp.lt.s32.totalorder %s42_s10, %s42_s10 }
  0x26   :  { %p857_p1 = scmp.ne.s32.totalorder %s42_s10, %s856_s13  ;;  %p862_p3 = scmp.lt.s32.totalorder %s856_s13, %s856_s13 }
  0x28   :  { %p863_p4 = por %p862_p3, %p861_p2 }
  0x2a   :  { %p864_p5 = pnand %p863_p4, %p857_p1 }
  0x2c   :  { %867 = shalt.err (!%p864_p5)
}
  0x2d   :  { %47 = dma.hbm_to_vmem [thread:$0]  %s1076_s2, 512, %s42_s10, [#allocation6], %s917_s21, %s917_s21, %s918_s22  }
  0x2e   :  { %s876_s0 = scalar_lea.vmem %s65_s12, 128  ;;  %p881_p7 = scmp.lt.s32.totalorder %s65_s12, %s65_s12 }
  0x2f   :  { %p877_p6 = scmp.ne.s32.totalorder %s65_s12, %s876_s0  ;;  %p882_p8 = scmp.lt.s32.totalorder %s876_s0, %s876_s0 }
  0x31   :  { %p883_p9 = por %p882_p8, %p881_p7 }
  0x33   :  { %p884_p10 = pnand %p883_p9, %p877_p6 }
  0x35   :  { %887 = shalt.err (!%p884_p10)
}
  0x36   :  { %67 = dma.hbm_to_vmem [thread:$0]  %s1078_s4, 128, %s65_s12, [#allocation9]  }
  0x37   :  { %908 = dma.done.wait [#allocation3], 128  }
  0x38   :  { %909 = vsyncadd [#allocation3], 4294967168 }
  0x39   :  { %910 = dma.done.wait [#allocation6], 1024  }
  0x3a   :  { %911 = vsyncadd [#allocation6], 4294966272 }
  0x3b   :  { %912 = dma.done.wait [#allocation9], 256  }
  0x3c   :  { %913 = vsyncadd [#allocation9], 4294967040  ;;  %v923_v0 = vmov 0.0   ;;  %vm924_vm0 = vmmov 0   ;;  %v87_v1 = vld [vmem:[#allocation5 + $0x18] sm:$0xff]  ;;  %v86_v2 = vld [vmem:[#allocation5 + $0x10] sm:$0xff]  ;;  %v259_v62 = vlaneseq }
  0x3d   :  { %699 = vmatprep.subr.mxu0 %v923_v0  ;;  %707 = vmatprep.mubr.msk.f32.mxu0 %vm924_vm0, %v923_v0  ;;  %v85_v3 = vld [vmem:[#allocation5 + $0x8] sm:$0xff]  ;;  %v84_v4 = vld [vmem:[#allocation5] sm:$0xff]  ;;  %v83_v5 = vld [vmem:[#allocation2] sm:$0xff]  ;;  %vm88_vm1 = vcmask 261120   ;;  %s925_s2 = smov 120   ;;  %s926_s4 = smov 100  }
  0x3e   :  { %700 = vmatpush3.msra.mxu0 %v87_v1  ;;  %s927_s17 = smov 92   ;;  %v1006_v11 = vld [vmem:[#allocation8] sm:$0xff]  ;;  %s928_s18 = smov 32   ;;  %vm206_vm2 = vcmask 31744   ;;  %v1009_v13 = vld [vmem:[#allocation10] sm:$0xff]  ;;  %vm298_vm3 = vcmask 64512  }
  0x3f   :  { %701 = vmatprep.subr.mxu0 %v923_v0  ;;  %s929_s19 = smov 112   ;;  %s930_s20 = smov 104   ;;  %v260_v63 = vshrl.u32 %v259_v62, 7 }
  0x40   :  { %702 = vmatpush3.msra.mxu0 %v86_v2  ;;  %s931_s21 = smov 124   ;;  %s932_s23 = smov 96   ;;  %v265_v2 = vand.u32 127, %v259_v62 }
  0x41   :  { %703 = vmatprep.subr.mxu0 %v923_v0  ;;  %s933_s24 = smov 4   ;;  %v261_v1 = vadd.s32 8, %v260_v63  ;;  %s935_s25 = smov 80  }
  0x42   :  { %704 = vmatpush3.msra.mxu0 %v85_v3  ;;  %s936_s26 = smov 24   ;;  %s937_s27 = smov 16  }
  0x43   :  { %705 = vmatprep.subr.mxu0 %v923_v0  ;;  %v267_v3 = vshra.s32 %v261_v1, 3  ;;  %s938_s28 = smov [#allocation11]  }
  0x44   :  { %706 = vmatpush3.msra.mxu0 %v84_v4  ;;  %v270_v4 = vshra.s32 %v265_v2, 3 }
  0x45   :  { %708 = vmatmul.mubr.msk.f32.vlgmr.msra.gmra.mxu0 %vm88_vm1, %v83_v5  ;;  %v275_v5 = vand.u32 7, %v265_v2 }
  0x46   :  { %vm272_vm4 = vcmp.eq.s32.totalorder %v267_v3, %v270_v4  ;;  %v567_v3 = vld [vmem:[#allocation7 + $0x18] sm:$0xff] }
 0x105   :  { %v997_v6 = vpop.f32.mrf.mxu0 }
 0x106   :  { %163 = vrot.lane.b32.xlu0 %v997_v6, %s925_s2  ;;  %v174_v10 = vsub.f32 0.0, %v997_v6  ;;  %v211_v38 = vmul.f32 %v1006_v11, %v997_v6 }
 0x107   :  { %v709_v7 = vpop.f32.mrf.mxu0 }
 0x108   :  { %v277_v7 = vand.u32 7, %v261_v1 }
 0x10a   :  { %vm281_vm5 = vcmp.le.s32.totalorder %v275_v5, %v277_v7  ;;  %v564_v7 = vld [vmem:[#allocation7] sm:$0xff] }
 0x10b   :  { %vm285_vm8 = vmand %vm272_vm4, %vm281_vm5 }
 0x178   :  { %v1000_v8 = vpop.permute.xlu0 %163 }
 0x179   :  { %235 = vrot.lane.b32.xlu1 %v1000_v8, %s926_s4  ;;  %v175_v9 = vsub.f32 0.0, %v1000_v8  ;;  %v212_v43 = vmul.f32 %v1006_v11, %v1000_v8 }
 0x17b   :  { %229 = vrot.lane.b32.xlu0 %v175_v9, %s927_s17 }
 0x17d   :  { %227 = vrot.lane.b32.xlu1 %v174_v10, %s927_s17 }
 0x17f   :  { %233 = vrot.lane.b32.xlu0 %v997_v6, %s926_s4 }
 0x181   :  { %242 = vrot.lane.b32.xlu1 %v1006_v11, %s928_s18 }
 0x1eb   :  { %v236_v12 = vpop.permute.xlu1 %235 }
 0x1ed   :  { %v230_v14 = vpop.permute.xlu0 %229 }
 0x1ee   :  { %v240_v15 = vsel %vm206_vm2, %v230_v14, %v236_v12  ;;  %v263_v12 = vadd.s32 24, %v260_v63 }
 0x1ef   :  { %v248_v16 = vmul.f32 %v240_v15, %v1009_v13  ;;  %v228_v17 = vpop.permute.xlu1 %227  ;;  %v934_v15 = vmov -1e+30  }
 0x1f1   :  { %v234_v18 = vpop.permute.xlu0 %233  ;;  %253 = vrot.lane.b32.xlu0 %v248_v16, %s928_s18  ;;  %v289_v16 = vsel %vm285_vm8, 0.0, %v934_v15 }
 0x1f2   :  { %v239_v19 = vsel %vm206_vm2, %v228_v17, %v234_v18  ;;  %v269_v17 = vshra.s32 %v263_v12, 3  ;;  %v279_v18 = vand.u32 7, %v263_v12 }
 0x1f3   :  { %v247_v20 = vmul.f32 %v239_v19, %v1009_v13  ;;  %v243_v21 = vpop.permute.xlu1 %242 }
 0x1f4   :  { %v246_v22 = vmul.f32 %v243_v21, %v1000_v8  ;;  %v245_v25 = vmul.f32 %v243_v21, %v997_v6  ;;  %vm274_vm12 = vcmp.eq.s32.totalorder %v269_v17, %v270_v4  ;;  %vm283_vm13 = vcmp.le.s32.totalorder %v275_v5, %v279_v18 }
 0x1f5   :  { %166 = vrot.lane.b32.xlu0 %v997_v6, %s929_s19  ;;  %251 = vrot.lane.b32.xlu1 %v247_v20, %s928_s18  ;;  %vm287_vm15 = vmand %vm274_vm12, %vm283_vm13 }
 0x1f9   :  { %169 = vrot.lane.b32.xlu1 %v997_v6, %s930_s20 }
 0x1fd   :  { %182 = vrot.lane.b32.xlu1 %v174_v10, %s931_s21  ;;  %v276_v10 = vand.u32 7, %v260_v63 }
 0x1ff   :  { %vm280_vm7 = vcmp.le.s32.totalorder %v275_v5, %v276_v10 }
 0x263   :  { %v254_v23 = vpop.permute.xlu0 %253 }
 0x264   :  { %v258_v24 = vadd.f32 %v254_v23, %v246_v22 }
 0x266   :  { %296 = vrot.lane.b32.xlu0 %v258_v24, %s932_s23 }
 0x267   :  { %v252_v26 = vpop.permute.xlu1 %251  ;;  %v167_v28 = vpop.permute.xlu0 %166 }
 0x268   :  { %v257_v27 = vadd.f32 %v252_v26, %v245_v25  ;;  %v176_v29 = vsub.f32 0.0, %v167_v28  ;;  %v213_v50 = vmul.f32 %v1006_v11, %v167_v28 }
 0x26a   :  { %194 = vrot.lane.b32.xlu0 %v997_v6, %s933_s24  ;;  %294 = vrot.lane.b32.xlu1 %v257_v27, %s932_s23 }
 0x26b   :  { %v170_v30 = vpop.permute.xlu1 %169 }
 0x26c   :  { %v177_v31 = vsub.f32 0.0, %v170_v30  ;;  %v214_v57 = vmul.f32 %v1006_v11, %v170_v30  ;;  %v262_v11 = vadd.s32 16, %v260_v63 }
 0x26e   :  { %184 = vrot.lane.b32.xlu0 %v175_v9, %s931_s21  ;;  %196 = vrot.lane.b32.xlu1 %v1000_v8, %s933_s24  ;;  %v266_v9 = vshra.s32 %v260_v63, 3  ;;  %v278_v14 = vand.u32 7, %v262_v11 }
 0x26f   :  { %v183_v32 = vpop.permute.xlu1 %182 }
 0x270   :  { %vm271_vm6 = vcmp.eq.s32.totalorder %v266_v9, %v270_v4  ;;  %vm282_vm11 = vcmp.le.s32.totalorder %v275_v5, %v278_v14  ;;  %v565_v5 = vld [vmem:[#allocation7 + $0x8] sm:$0xff] }
 0x271   :  { %vm284_vm9 = vmand %vm271_vm6, %vm280_vm7 }
 0x272   :  { %186 = vrot.lane.b32.xlu0 %v176_v29, %s931_s21  ;;  %198 = vrot.lane.b32.xlu1 %v167_v28, %s933_s24  ;;  %v288_v20 = vsel %vm284_vm9, 0.0, %v934_v15  ;;  %v291_v28 = vsel %vm287_vm15, 0.0, %v934_v15 }
 0x276   :  { %188 = vrot.lane.b32.xlu0 %v177_v31, %s931_s21  ;;  %200 = vrot.lane.b32.xlu1 %v170_v30, %s933_s24 }
 0x2d8   :  { %v297_v33 = vpop.permute.xlu0 %296 }
 0x2d9   :  { %710 = vmatprep.subr.msk.mxu1 %vm298_vm3, %v297_v33 }
 0x2da   :  { %711 = vmatpush3.xpose.msk.msra.mxu1 %vm298_vm3, %v297_v33 }
 0x2db   :  { %712 = vmatprep.subr.msk.mxu1 %vm298_vm3, %v297_v33 }
 0x2dc   :  { %v195_v34 = vpop.permute.xlu0 %194  ;;  %v295_v35 = vpop.permute.xlu1 %294 }
 0x2dd   :  { %v207_v36 = vsel %vm206_vm2, %v183_v32, %v195_v34 }
 0x2de   :  { %v215_v37 = vmul.f32 %v207_v36, %v1009_v13  ;;  %713 = vmatpush3.xpose.msk.msra.mxu1 %vm298_vm3, %v297_v33 }
 0x2df   :  { %714 = vmatprep.subr.msk.mxu1 %vm298_vm3, %v295_v35 }
 0x2e0   :  { %v185_v39 = vpop.permute.xlu0 %184  ;;  %v197_v40 = vpop.permute.xlu1 %196  ;;  %v219_v41 = vadd.f32 %v215_v37, %v211_v38 }
 0x2e1   :  { %v208_v42 = vsel %vm206_vm2, %v185_v39, %v197_v40 }
 0x2e2   :  { %v216_v44 = vmul.f32 %v208_v42, %v1009_v13  ;;  %715 = vmatpush3.xpose.msk.msra.mxu1 %vm298_vm3, %v295_v35  ;;  %v223_v45 = vmul.f32 0.35355338, %v219_v41 }
 0x2e3   :  { %716 = vmatprep.subr.msk.mxu1 %vm298_vm3, %v295_v35 }
 0x2e4   :  { %v220_v46 = vadd.f32 %v216_v44, %v212_v43  ;;  %v187_v47 = vpop.permute.xlu0 %186  ;;  %718 = vmatprep.mubr.msk.f32.mxu1 %vm298_vm3, %v223_v45  ;;  %v199_v48 = vpop.permute.xlu1 %198 }
 0x2e5   :  { %v209_v49 = vsel %vm206_vm2, %v187_v47, %v199_v48 }
 0x2e6   :  { %v224_v51 = vmul.f32 0.35355338, %v220_v46  ;;  %v217_v52 = vmul.f32 %v209_v49, %v1009_v13  ;;  %717 = vmatpush3.xpose.msk.msra.mxu1 %vm298_vm3, %v295_v35 }
 0x2e8   :  { %v221_v53 = vadd.f32 %v217_v52, %v213_v50  ;;  %v189_v54 = vpop.permute.xlu0 %188  ;;  %v201_v55 = vpop.permute.xlu1 %200 }
 0x2e9   :  { %v210_v56 = vsel %vm206_vm2, %v189_v54, %v201_v55  ;;  %719 = vmatmul.mubr.msk.f32.vlgmr.msra.gmra.mxu1 %vm298_vm3, %v224_v51  ;;  %vm562_vm2 = vcmask 195584  }
 0x2ea   :  { %v225_v58 = vmul.f32 0.35355338, %v221_v53  ;;  %v218_v59 = vmul.f32 %v210_v56, %v1009_v13  ;;  %v268_v13 = vshra.s32 %v262_v11, 3 }
 0x2ec   :  { %v222_v60 = vadd.f32 %v218_v59, %v214_v57  ;;  %721 = vmatprep.mubr.msk.f32.mxu1 %vm298_vm3, %v225_v58  ;;  %vm273_vm10 = vcmp.eq.s32.totalorder %v268_v13, %v270_v4  ;;  %v566_v4 = vld [vmem:[#allocation7 + $0x10] sm:$0xff] }
 0x2ed   :  { %vm286_vm14 = vmand %vm273_vm10, %vm282_vm11 }
 0x2ee   :  { %v226_v61 = vmul.f32 0.35355338, %v222_v60  ;;  %v290_v27 = vsel %vm286_vm14, 0.0, %v934_v15 }
 0x2f0   :  { %722 = vmatmul.mubr.msk.f32.gmra.mxu1 %vm298_vm3, %v226_v61 }
 0x3a9   :  { %v720_v19 = vpop.f32.mrf.mxu1 }
 0x3aa   :  { %v387_v21 = vadd.f32 %v720_v19, %v289_v16 }
 0x3ab   :  { %v381_v22 = vpop.f32.mrf.mxu1 }
 0x3ac   :  { %v382_v23 = vadd.f32 %v381_v22, %v288_v20  ;;  %v403_v24 = vsel %vm88_vm1, %v387_v21, -inf }
 0x3ad   :  { %404 = vmax.xlane.f32.xlu1 %v403_v24 }
 0x3ae   :  { %v400_v25 = vsel %vm88_vm1, %v382_v23, -inf }
 0x3af   :  { %401 = vmax.xlane.f32.xlu0 %v400_v25 }
 0x3b0   :  { %v723_v26 = vpop.f32.mrf.mxu1 }
 0x3b1   :  { %v397_v31 = vadd.f32 %v723_v26, %v291_v28 }
 0x3b2   :  { %v391_v29 = vpop.f32.mrf.mxu1 }
 0x3b3   :  { %v392_v30 = vadd.f32 %v391_v29, %v290_v27  ;;  %v409_v33 = vsel %vm88_vm1, %v397_v31, -inf }
 0x3b5   :  { %v406_v32 = vsel %vm88_vm1, %v392_v30, -inf }
 0x3b6   :  { %407 = vmax.xlane.f32.xlu0 %v406_v32 }
 0x3ba   :  { %410 = vmax.xlane.f32.xlu0 %v409_v33 }
 0x436   :  { %v405_v34 = vpop.xlane.xlu1 %404 }
 0x437   :  { %v413_v35 = vsub.f32 %v387_v21, %v405_v34 }
 0x438   :  { %v402_v36 = vpop.xlane.xlu0 %401 }
 0x439   :  { %v418_v37 = vmul.f32 1.442695, %v413_v35  ;;  %v412_v38 = vsub.f32 %v382_v23, %v402_v36 }
 0x43b   :  { %772 = vpow2.f32 %v418_v37  ;;  %v416_v39 = vmul.f32 1.442695, %v412_v38 }
 0x43d   :  { %774 = vpow2.f32 %v416_v39 }
 0x43f   :  { %v408_v40 = vpop.xlane.xlu0 %407 }
 0x440   :  { %v414_v41 = vsub.f32 %v392_v30, %v408_v40 }
 0x442   :  { %v420_v42 = vmul.f32 1.442695, %v414_v41 }
 0x443   :  { %v411_v43 = vpop.xlane.xlu0 %410 }
 0x444   :  { %776 = vpow2.f32 %v420_v42  ;;  %v415_v44 = vsub.f32 %v397_v31, %v411_v43 }
 0x446   :  { %v422_v45 = vmul.f32 1.442695, %v415_v44 }
 0x448   :  { %v773_v46 = vpop.eup %772  ;;  %778 = vpow2.f32 %v422_v45 }
 0x449   :  { %v427_v47 = vsel %vm88_vm1, %v773_v46, 0.0 }
 0x44a   :  { %v775_v48 = vpop.eup %774  ;;  %428 = vadd.xlane.f32.xlu0 %v427_v47 }
 0x44b   :  { %v424_v49 = vsel %vm88_vm1, %v775_v48, 0.0 }
 0x44c   :  { %425 = vadd.xlane.f32.xlu1 %v424_v49 }
 0x451   :  { %v777_v50 = vpop.eup %776 }
 0x452   :  { %v430_v51 = vsel %vm88_vm1, %v777_v50, 0.0 }
 0x453   :  { %431 = vadd.xlane.f32.xlu1 %v430_v51 }
 0x455   :  { %v779_v52 = vpop.eup %778 }
 0x456   :  { %v433_v53 = vsel %vm88_vm1, %v779_v52, 0.0 }
 0x457   :  { %434 = vadd.xlane.f32.xlu0 %v433_v53 }
 0x464   :  { %446 = vrot.lane.b32.xlu1 %v1000_v8, %s935_s25 }
 0x46d   :  { %444 = vrot.lane.b32.xlu0 %v997_v6, %s935_s25 }
 0x4d3   :  { %v429_v54 = vpop.xlane.xlu0 %428 }
 0x4d5   :  { %v426_v55 = vpop.xlane.xlu1 %425 }
 0x4d6   :  { %780 = vrcp.f32 %v426_v55 }
 0x4d7   :  { %782 = vrcp.f32 %v429_v54 }
 0x4dc   :  { %v432_v56 = vpop.xlane.xlu1 %431 }
 0x4dd   :  { %784 = vrcp.f32 %v432_v56 }
 0x4e0   :  { %v435_v57 = vpop.xlane.xlu0 %434  ;;  %v447_v58 = vpop.permute.xlu1 %446 }
 0x4e1   :  { %786 = vrcp.f32 %v435_v57  ;;  %724 = vmatprep.subr.mxu0 %v447_v58 }
 0x4e2   :  { %725 = vmatpush3.msra.mxu0 %v447_v58 }
 0x4e3   :  { %v781_v59 = vpop.eup %780  ;;  %726 = vmatprep.subr.mxu0 %v447_v58 }
 0x4e4   :  { %v783_v60 = vpop.eup %782  ;;  %v445_v61 = vpop.permute.xlu0 %444  ;;  %727 = vmatpush3.msra.mxu0 %v447_v58  ;;  %v440_v62 = vmul.f32 %v781_v59, %v775_v48 }
 0x4e5   :  { %728 = vmatprep.subr.mxu0 %v445_v61  ;;  %v441_v6 = vmul.f32 %v783_v60, %v773_v46 }
 0x4e6   :  { %729 = vmatpush3.msra.mxu0 %v445_v61  ;;  %732 = vmatprep.mubr.msk.f32.mxu0 %vm88_vm1, %v440_v62 }
 0x4e7   :  { %730 = vmatprep.subr.mxu0 %v445_v61 }
 0x4e8   :  { %731 = vmatpush3.msra.mxu0 %v445_v61 }
 0x4e9   :  { %733 = vmatmul.mubr.msk.f32.vlgmr.msra.gmra.mxu0 %vm88_vm1, %v441_v6  ;;  %738 = vmatprep.subr.mxu0 %v923_v0 }
 0x4ea   :  { %v785_v8 = vpop.eup %784  ;;  %739 = vmatpush3.msra.mxu0 %v567_v3 }
 0x4eb   :  { %v442_v63 = vmul.f32 %v785_v8, %v777_v50  ;;  %740 = vmatprep.subr.mxu0 %v923_v0 }
 0x4ec   :  { %741 = vmatpush3.msra.mxu0 %v566_v4 }
 0x4ed   :  { %735 = vmatprep.mubr.msk.f32.mxu0 %vm88_vm1, %v442_v63  ;;  %742 = vmatprep.subr.mxu0 %v923_v0 }
 0x4ee   :  { %v787_v1 = vpop.eup %786  ;;  %743 = vmatpush3.msra.mxu0 %v565_v5 }
 0x4ef   :  { %v443_v2 = vmul.f32 %v787_v1, %v779_v52  ;;  %744 = vmatprep.subr.mxu0 %v923_v0 }
 0x4f0   :  { %745 = vmatpush3.msra.mxu0 %v564_v7 }
 0x4f1   :  { %736 = vmatmul.mubr.msk.f32.gmra.mxu0 %vm88_vm1, %v443_v2 }
 0x4f2   :  { %746 = vmatprep.mubr.msk.f32.mxu0 %vm924_vm0, %v923_v0  ;;  %vm560_vm0 = vcmask 130048  }
 0x5a9   :  { %v734_v9 = vpop.f32.mrf.mxu0 }
 0x5aa   :  { %548 = vrot.lane.b32.xlu1 %v734_v9, %s918_s22  ;;  %s648_s22 = sshll.u32 %s938_s28, 4  ;;  %s649_s22 = int_to_ptr.vmem [resolvable:$true] %s648_s22 }
 0x5ab   :  { %v528_v10 = vpop.f32.mrf.mxu0  ;;  %s888_s29 = scalar_lea.vmem %s649_s22, 128  ;;  %p893_p12 = scmp.lt.s32.totalorder %s649_s22, %s649_s22 }
 0x5ac   :  { %p889_p11 = scmp.ne.s32.totalorder %s649_s22, %s888_s29  ;;  %p894_p13 = scmp.lt.s32.totalorder %s888_s29, %s888_s29 }
 0x5ae   :  { %p895_p0 = por %p894_p13, %p893_p12 }
 0x5b0   :  { %p896_p1 = pnand %p895_p0, %p889_p11 }
 0x5b1   :  { %v737_v11 = vpop.f32.mrf.mxu0 }
 0x5b2   :  { %556 = vrot.lane.b32.xlu0 %v737_v11, %s936_s26 }
 0x5b3   :  { %v538_v12 = vpop.f32.mrf.mxu0 }
 0x5b4   :  { %552 = vrot.lane.b32.xlu1 %v538_v12, %s937_s27 }
 0x61c   :  { %v549_v13 = vpop.permute.xlu1 %548 }
 0x61d   :  { %v559_v14 = vsel %vm298_vm3, %v528_v10, %v549_v13 }
 0x624   :  { %v557_v16 = vpop.permute.xlu0 %556 }
 0x626   :  { %v553_v15 = vpop.permute.xlu1 %552 }
 0x627   :  { %v561_v0 = vsel %vm560_vm0, %v559_v14, %v553_v15 }
 0x628   :  { %v563_v17 = vsel %vm562_vm2, %v561_v0, %v557_v16 }
 0x629   :  { %747 = vmatmul.mubr.msk.f32.vlgmr.msra.gmra.mxu0 %vm88_vm1, %v563_v17 }
 0x6e9   :  { %v637_v18 = vpop.f32.mrf.mxu0 }
 0x6ea   :  { %641 = vst.msk [vmem:[#allocation11] sm:$0xff] %vm88_vm1, %v637_v18 }
 0x6eb   :  { %v748_v19 = vpop.f32.mrf.mxu0 }
 0x6ec   :  { %899 = shalt.err (!%p896_p1)
}
 0x6ed   :  { %651 = dma.vmem_to_hbm [thread:$0]  %s649_s22, 128, %s1079_s5, [#allocation4]  }
 0x6ee   :  { %914 = dma.done.wait [#allocation4], 128  }
 0x6ef   :  { %915 = vsyncadd [#allocation4], 4294967168 }
 0x6f0   :  { %655 = vsyncpa [#allocation3], 1 }
 0x6f1   :  { %656 = vsyncpa [#allocation6], 1 }
 0x6f2   :  { %657 = vsyncpa [#allocation9], 1 }
 0x6f3   :  { %658 = vsyncpa [#allocation4], 1 }

</bundles_post_ra>
